<compile_context>
chip_gen: v6e
topology: v6e:2x2x1
jax: 0.10.0
libtpu: 0.0.40
codegen_flags: <defaults>
</compile_context>

<pallas_src>
import jax
import jax.numpy as jnp
from jax import lax
from jax.experimental import pallas as pl
from jax.experimental.pallas import tpu as pltpu


# ---------------------------------------------------------------------------
# Kernels
# ---------------------------------------------------------------------------

def _gram_decoder_kernel(i_ref, j_ref, g_ref, out_ref):
    """adj[e] = G[i_e, j_e], with G = z @ z.T hoisted to the wrapper.

    i_ref, j_ref : (1, 1, TE) int32 edge endpoints (lane-dense)
    g_ref        : (N, N)     float32 Gram matrix, resident in VMEM (1 buffer)
    out_ref      : (1, 1, TE) float32
    """
    n = g_ref.shape[0]
    te = i_ref.shape[2]

    g = g_ref[...]                                                  # (N, N) f32

    i_row = i_ref[0]                                                # (1, TE)
    j_row = j_ref[0]                                                # (1, TE)
    node_ids = lax.broadcasted_iota(jnp.int32, (n, te), 0)          # row = node id

    # One MXU gather: column e of sel_j is G[:, j_e] = z @ z[j_e].
    # One-hot matmul gathers are exact, so f32 operands keep full accuracy.
    oh_j = (j_row == node_ids).astype(g.dtype)                      # (N, TE)
    sel_j = jnp.dot(g, oh_j, preferred_element_type=jnp.float32)    # (N, TE)

    # Select row i_e, reduce over the sublane (node) axis -> lane-dense (1, TE).
    oh_i = (i_row == node_ids)                                      # (N, TE) bool
    adj = jnp.sum(jnp.where(oh_i, sel_j, 0.0), axis=0, keepdims=True)
    out_ref[0] = adj.astype(out_ref.dtype)


def _gather_decoder_kernel(i_ref, j_ref, zt_ref, out_ref):
    """adj[e] = <z[i_e], z[j_e]> via two one-hot column gathers of z.T.

    Used when N >= 2*D (Gram loses on FLOPs / VMEM there).
    zt_ref : (D, N) z transposed, resident in VMEM (1 buffer), native dtype.
    """
    n = zt_ref.shape[1]
    te = i_ref.shape[2]

    zt = zt_ref[...]                                                # (D, N)

    i_row = i_ref[0]
    j_row = j_ref[0]
    node_ids = lax.broadcasted_iota(jnp.int32, (n, te), 0)

    # One-hot is exact in any dtype -> build in zt's dtype so a bf16 z keeps
    # both MXU operands on the fast bf16 path; accumulation stays f32.
    oh_i = (i_row == node_ids).astype(zt.dtype)                     # (N, TE)
    oh_j = (j_row == node_ids).astype(zt.dtype)                     # (N, TE)

    sel_i = jnp.dot(zt, oh_i, preferred_element_type=jnp.float32)   # (D, TE) col e = z[i_e]
    sel_j = jnp.dot(zt, oh_j, preferred_element_type=jnp.float32)   # (D, TE) col e = z[j_e]

    adj = jnp.sum(sel_i * sel_j, axis=0, keepdims=True)             # (1, TE) lane-dense
    out_ref[0] = adj.astype(out_ref.dtype)


# ---------------------------------------------------------------------------
# Wrapper
# ---------------------------------------------------------------------------

def inner_product_decoder(z, i_list, j_list, *, te=None):
    """Pallas equivalent of InnerProductDecoder.forward(z, i_list, j_list)."""
    N, D = z.shape
    E = int(i_list.shape[0])
    assert int(j_list.shape[0]) == E

    # --- per-step edge-tile size ---------------------------------------------
    # Grow TE to amortize the ~0.35us/step grid overhead on large E, but keep
    # >= 4 grid steps (v7x megacore sharding of the "parallel" axis) and keep
    # the (N, TE) mask / gather intermediates bounded in VMEM.
    if te is None:
        te = 512
        while (te < 2048
               and pl.cdiv(E, 2 * te) >= 4
               and 20 * N * (2 * te) < (8 << 20)):
            te *= 2
    T = pl.cdiv(E, te)
    E_pad = T * te

    def prep(idx):
        idx = jnp.asarray(idx, jnp.int32)
        if E_pad != E:
            # Padded tail edges reference node 0; their (valid) dot products
            # are sliced off below.
            idx = jnp.pad(idx, (0, E_pad - E))
        return idx.reshape(T, 1, te)

    i3 = prep(i_list)
    j3 = prep(j_list)

    # --- formulation dispatch -------------------------------------------------
    # Gram path:   per-tile MXU cost N^2*TE,   resident N*N*4 bytes.
    # Gather path: per-tile MXU cost 2*N*D*TE, resident N*D bytes.
    # Crossover at N = 2*D; also require G to fit a modest VMEM budget.
    gram_bytes = 4 * N * N
    use_gram = (N < 2 * D) and (gram_bytes <= (8 << 20))

    if use_gram:
        # Hoisted out of the grid loop: computed once, here.  Keep G in f32
        # (one-hot gathers against it are exact; rounding G to bf16 is not).
        resident = jnp.dot(z, z.T, preferred_element_type=jnp.float32)  # (N, N)
        kernel = _gram_decoder_kernel
        per_step_bytes = 4 * (4 * N * te)                 # oh_j, sel_j, select temps
    else:
        # TODO(synk): beyond the one-hot/VMEM ceiling use a scalar-prefetch +
        # manual-DMA row gather (z in pl.ANY) instead of O(N*TE) masks.
        resident = z.T                                    # (D, N), native dtype
        kernel = _gather_decoder_kernel
        per_step_bytes = 4 * (2 * N * te + 2 * D * te)    # masks + gathered columns

    resident_bytes = resident.size * resident.dtype.itemsize
    tile_bytes = 2 * 3 * (te * 4) * 2                     # double-buffered i/j/out tiles
    need = resident_bytes + per_step_bytes + tile_bytes
    vmem_limit = int(min(max(2 * need + (4 << 20), 16 << 20), 48 << 20))

    # Whole-array VMEM placement: copied in once, not pipelined/double-buffered.
    resident_spec = pl.BlockSpec(memory_space=pltpu.MemorySpace.VMEM)

    out = pl.pallas_call(
        kernel,
        out_shape=jax.ShapeDtypeStruct((T, 1, te), jnp.float32),
        grid_spec=pltpu.PrefetchScalarGridSpec(
            num_scalar_prefetch=0,
            grid=(T,),
            in_specs=[
                pl.BlockSpec((1, 1, te), lambda t: (t, 0, 0)),   # i tile, lane-dense
                pl.BlockSpec((1, 1, te), lambda t: (t, 0, 0)),   # j tile, lane-dense
                resident_spec,                                   # G or z.T, resident once
            ],
            out_specs=pl.BlockSpec((1, 1, te), lambda t: (t, 0, 0)),
        ),
        compiler_params=pltpu.CompilerParams(
            dimension_semantics=("parallel",),
            vmem_limit_bytes=vmem_limit,
        ),
    )(i3, j3, resident)

    return out.reshape(-1)[:E]


# ---------------------------------------------------------------------------
# Demo / correctness check
# ---------------------------------------------------------------------------

if __name__ == "__main__":
    # --- small-N regime (N < 2D): Gram-matrix path ---------------------------
    key = jax.random.PRNGKey(0)
    kz, ki, kj = jax.random.split(key, 3)

    N, D, E = 64, 128, 2000            # E not a multiple of TE on purpose
    z = jax.random.normal(kz, (N, D), dtype=jnp.float32)
    i_list = jax.random.randint(ki, (E,), 0, N, dtype=jnp.int32)
    j_list = jax.random.randint(kj, (E,), 0, N, dtype=jnp.int32)

    adj = jax.block_until_ready(inner_product_decoder(z, i_list, j_list))
    ref = jnp.sum(z[i_list] * z[j_list], axis=-1)
    assert adj.shape == (E,) and adj.dtype == jnp.float32
    err = float(jnp.max(jnp.abs(adj - ref)))
    assert jnp.allclose(adj, ref, atol=1e-3, rtol=1e-3), err

    # --- wide-N regime (N >= 2D): direct one-hot gather path -----------------
    kz2, ki2, kj2 = jax.random.split(jax.random.PRNGKey(1), 3)
    N2, D2, E2 = 512, 32, 700
    z2 = jax.random.normal(kz2, (N2, D2), dtype=jnp.float32)
    i2 = jax.random.randint(ki2, (E2,), 0, N2, dtype=jnp.int32)
    j2 = jax.random.randint(kj2, (E2,), 0, N2, dtype=jnp.int32)

    adj2 = jax.block_until_ready(inner_product_decoder(z2, i2, j2))
    ref2 = jnp.sum(z2[i2] * z2[j2], axis=-1)
    err2 = float(jnp.max(jnp.abs(adj2 - ref2)))
    assert adj2.shape == (E2,) and jnp.allclose(adj2, ref2, atol=1e-3, rtol=1e-3), err2

    print("KERNEL_OK")
</pallas_src>

<mosaic_0001>
module attributes {stable_mosaic.version = 11 : i64} {
  func.func @_gram_decoder_kernel(%arg0: i32, %arg1: memref<1x1x512xi32, #tpu.memory_space<vmem>>, %arg2: memref<1x1x512xi32, #tpu.memory_space<vmem>>, %arg3: memref<64x64xf32, #tpu.memory_space<vmem>>, %arg4: memref<1x1x512xf32, #tpu.memory_space<vmem>>) attributes {dimension_semantics = [#tpu.dimension_semantics<parallel>], iteration_bounds = array<i64: 4>, scalar_prefetch = 0 : i64, scratch_operands = 0 : i64, tpu.core_type = #tpu.core_type<tc>, window_params = [{transform_indices = @transform_0, window_bounds = array<i64: 1, 1, 512>}, {transform_indices = @transform_1, window_bounds = array<i64: 1, 1, 512>}, {pipeline_mode = #tpu.pipeline_mode<synchronous>, transform_indices = @transform_2, window_bounds = array<i64: 64, 64>}, {transform_indices = @transform_3, window_bounds = array<i64: 1, 1, 512>}]} {
    %c0 = arith.constant 0 : index
    %c0_0 = arith.constant 0 : index
    %0 = vector.load %arg3[%c0, %c0_0] : memref<64x64xf32, #tpu.memory_space<vmem>>, vector<64x64xf32>
    %c0_1 = arith.constant 0 : index
    %c0_2 = arith.constant 0 : index
    %c0_3 = arith.constant 0 : index
    %1 = vector.load %arg1[%c0_1, %c0_2, %c0_3] : memref<1x1x512xi32, #tpu.memory_space<vmem>>, vector<1x1x512xi32>
    %2 = vector.shape_cast %1 : vector<1x1x512xi32> to vector<1x512xi32>
    %c0_4 = arith.constant 0 : index
    %c0_5 = arith.constant 0 : index
    %c0_6 = arith.constant 0 : index
    %3 = vector.load %arg2[%c0_4, %c0_5, %c0_6] : memref<1x1x512xi32, #tpu.memory_space<vmem>>, vector<1x1x512xi32>
    %4 = vector.shape_cast %3 : vector<1x1x512xi32> to vector<1x512xi32>
    %5 = tpu.iota {dimensions = array<i32: 0>} : vector<64x512xi32>
    %6 = vector.broadcast %4 : vector<1x512xi32> to vector<64x512xi32>
    %7 = arith.cmpi eq, %6, %5 : vector<64x512xi32>
    %8 = arith.extui %7 : vector<64x512xi1> to vector<64x512xi32>
    %9 = arith.sitofp %8 : vector<64x512xi32> to vector<64x512xf32>
    %cst = arith.constant dense<0.000000e+00> : vector<64x512xf32>
    %10 = tpu.matmul %0, %9, %cst {dimension_numbers = #tpu.dot_dimension_numbers<[1], [0], [0], [1], [0, 0, 1, 1], [], []>} : vector<64x64xf32>, vector<64x512xf32>, vector<64x512xf32> -> vector<64x512xf32>
    %11 = vector.broadcast %2 : vector<1x512xi32> to vector<64x512xi32>
    %12 = arith.cmpi eq, %11, %5 : vector<64x512xi32>
    %cst_7 = arith.constant 0.000000e+00 : f32
    %13 = vector.broadcast %cst_7 : f32 to vector<64x512xf32>
    %14 = arith.select %12, %10, %13 : vector<64x512xi1>, vector<64x512xf32>
    %cst_8 = arith.constant dense<0.000000e+00> : vector<512xf32>
    %15 = vector.multi_reduction <add>, %14, %cst_8 [0] : vector<64x512xf32> to vector<512xf32>
    %16 = vector.shape_cast %15 : vector<512xf32> to vector<1x512xf32>
    %c0_9 = arith.constant 0 : index
    %c0_10 = arith.constant 0 : index
    %c0_11 = arith.constant 0 : index
    %17 = vector.load %arg4[%c0_9, %c0_10, %c0_11] : memref<1x1x512xf32, #tpu.memory_space<vmem>>, vector<1x1x512xf32>
    %18 = vector.shape_cast %17 : vector<1x1x512xf32> to vector<1x512xf32>
    %19 = vector.shape_cast %16 : vector<1x512xf32> to vector<1x1x512xf32>
    tpu.vector_store %arg4[%c0_9, %c0_10, %c0_11], %19 {strides = array<i32>} : memref<1x1x512xf32, #tpu.memory_space<vmem>>, vector<1x1x512xf32>,
    return
  }
  func.func @transform_0(%arg0: i32) -> (i32, i32, i32) {
    %c0_i32 = arith.constant 0 : i32
    %c0_i32_0 = arith.constant 0 : i32
    %c0_i32_1 = arith.constant 0 : i32
    return %arg0, %c0_i32, %c0_i32_0 : i32, i32, i32
  }
  func.func @transform_1(%arg0: i32) -> (i32, i32, i32) {
    %c0_i32 = arith.constant 0 : i32
    %c0_i32_0 = arith.constant 0 : i32
    %c0_i32_1 = arith.constant 0 : i32
    return %arg0, %c0_i32, %c0_i32_0 : i32, i32, i32
  }
  func.func @transform_2(%arg0: i32) -> (i32, i32) {
    %c0_i32 = arith.constant 0 : i32
    %c0_i32_0 = arith.constant 0 : i32
    %c0_i32_1 = arith.constant 0 : i32
    return %c0_i32, %c0_i32_0 : i32, i32
  }
  func.func @transform_3(%arg0: i32) -> (i32, i32, i32) {
    %c0_i32 = arith.constant 0 : i32
    %c0_i32_0 = arith.constant 0 : i32
    %c0_i32_1 = arith.constant 0 : i32
    return %arg0, %c0_i32, %c0_i32_0 : i32, i32, i32
  }
}

</mosaic_0001>

<bundles_post_ra>
// kernel: tpu_custom_call.1
= control target key start
LH: loop header
LB: loop body
LE: loop exit
PB: predicated region body
PF: predicated region fallthrough
CT: control target
= control target key end

     0   :  { %8 = vsyncpa [#allocation3], 0  ;;  %s1807_s0 = inlined_call_operand.hbm [shape: s32[4,1,512], index: 0, kind: input, shape index: {}]   ;;  %s1808_s1 = inlined_call_operand.hbm [shape: s32[4,1,512], index: 1, kind: input, shape index: {}]   ;;  %s1809_s2 = inlined_call_operand.hbm [shape: f32[64,64], index: 2, kind: input, shape index: {}]   ;;  %s1810_s3 = inlined_call_operand.hbm [shape: f32[4,1,512], index: 3, kind: output, shape index: {}]  }
   0x1   :  { %10 = vsyncpa [#allocation3 + $0x1], 0 }
   0x2   :  { %11 = vsyncpa [#allocation6], 0 }
   0x3   :  { %13 = vsyncpa [#allocation6 + $0x1], 0 }
   0x4   :  { %14 = vsyncpa [#allocation4], 0 }
   0x5   :  { %16 = vsyncpa [#allocation4 + $0x1], 0  ;;  %s1259_s12 = smov 0   ;;  %s1261_s13 = smov 0  }
   0x6   :  { %s1263_s14 = smov 0   ;;  %s1265_s15 = smov 0  }
   0x7 LB: > { %s1280_s16 = sadd.s32 4294967295, %s1228_s15   ;;  %s904_s17 = sadd.s32 4294967294, %s1228_s15   ;;  %s1228_s15 = sphi %s1265_s15, %s1841_s15   ;;  %s1224_s14 = sphi %s1263_s14, %s1840_s14   ;;  %s1220_s13 = sphi %s1261_s13, %s1839_s13   ;;  %s1216_s12 = sphi %s1259_s12, %s1838_s12  }
   0x8   : > { %p42_p0 = scmp.ne.s32.totalorder %s1220_s13, %s1216_s12  ;;  %p1811_p1 = scmp.eq.s32.totalorder %s1280_s16, 0 }
   0x9   : > { %p119_p3 = scmp.eq.s32.totalorder %s904_s17, 3  ;;  %p905_p5 = scmp.ge.s32.totalorder %s1228_s15, 1 }
   0xa   : > { %p1289_p4 = por %p1811_p1, %p42_p0  ;;  %p126_p7 = scmp.lt.s32.totalorder %s1228_s15, 5 }
   0xb   : > { %p1294_p6 = por %p119_p3, %p42_p0  ;;  %s1230_s21 = smov [#allocation7]  }
   0xc   : > { %s1815_s18 = scalar_select %p1289_p4, 1, 0 }
   0xd   : > { %s1816_s19 = scalar_select %p1294_p6, 1, 0 }
   0xe   : > { %p1299_p8 = pnand %p905_p5, %p126_p7  ;;  %s138_s22 = sshll.u32 %s1230_s21, 4  ;;  %s139_s22 = int_to_ptr.vmem [resolvable:$true] %s138_s22 }
   0xf   : > { %s1312_s24 = sadd.s32 1, %s1228_s15   ;;  %s29_s25 = sadd.s32 1, %s1224_s14 }
  0x10   : > { %s1817_s20 = scalar_select %p1299_p8, 1, 0 }
  0x11   : > { %p1017_p9 = pneg %p1299_p8  ;;  %s26_s26 = ssub.s32 %s1228_s15, %s1312_s24 }
  0x12   : > { %s1085_s27 = scalar_lea.vmem %s139_s22, 1024  ;;  %p1093_p3 = scmp.lt.s32.totalorder %s139_s22, %s139_s22 }
  0x13   : > { %p1307_p10 = pnand %p1017_p9, %p1811_p1  ;;  %p1086_p12 = scmp.ne.s32.totalorder %s139_s22, %s1085_s27 }
  0x14   : > { %p1094_p5 = scmp.lt.s32.totalorder %s1085_s27, %s1085_s27 }
  0x15   : > { %p1076_p11 = pneg %p1307_p10 }
  0x16   : > { %p1095_p7 = por %p1094_p5, %p1093_p3 }
  0x17   : > { %p1088_p13 = pnand %p1086_p12, %p1076_p11 }
  0x19   : > { %p1089_p0 = pneg %p1088_p13 }
  0x1b   : > { %p1096_p2 = pnand %p1095_p7, %p1089_p0 }
  0x1d   : > { %1099 = shalt.err (!%p1096_p2)
}
  0x1e   : > { %s1231_s28 = smov 128   ;;  %s1232_s29 = smov 8  }
  0x1f   : > { %1020 = dma.hbm_to_vmem [thread:$0]  (!%p1307_p10), %s1809_s2, 1024, %s139_s22, [#allocation6], %s1231_s28, %s1231_s28, %s1232_s29  }
  0x20   : > { %p27_p9 = scmp.eq.s32.totalorder %s26_s26, 0  ;;  %p36_p11 = scmp.ne.s32.totalorder %s1224_s14, %s1220_s13 }
  0x21   : > { %p37_p12 = scmp.eq.s32.totalorder %s1228_s15, 0  ;;  %p1033_p2 = scmp.lt.s32.totalorder %s1228_s15, 4 }
  0x22   : > { %s1329_s5 = scalar_select %p27_p9, %s1224_s14, %s29_s25  }
  0x23   : > { %p38_p13 = por %p37_p12, %p36_p11  ;;  %p1819_p0 = scmp.eq.s32.totalorder %s1280_s16, 3 }
  0x24   : > { %s152_s7 = sand.u32 1, %s1224_s14   ;;  %s1004_s8 = sshll.u32 %s1228_s15, 6 }
  0x25   : > { %p1333_p3 = por %p1819_p0, %p36_p11  ;;  %s1339_s9 = sshll.u32 %s152_s7, 2 }
  0x26   : > { %s1344_s17 = scalar_lea.hbm %s1807_s0, %s1004_s8  ;;  %s156_s21 = scalar_lea.vmem [#allocation2], %s1339_s9 }
  0x27   : > { %s1820_s6 = scalar_select %p1333_p3, 1, 0 }
  0x28   : > { %s164_s22 = sshll.u32 %s156_s21, 4  ;;  %p1347_p10 = pnand %p1033_p2, %p38_p13  ;;  %s165_s22 = int_to_ptr.vmem [resolvable:$true] %s164_s22 }
  0x29   : > { %s1354_s27 = scalar_lea.hbm %s1808_s1, %s1004_s8  ;;  %s153_s28 = scalar_lea.sflag [#allocation3], %s152_s7 }
  0x2a   : > { %s1100_s29 = scalar_lea.hbm %s1344_s17, 64  ;;  %p1102_p7 = pneg %p1347_p10 }
  0x2b   : > { %p1101_p5 = scmp.ne.s32.totalorder %s1344_s17, %s1100_s29  ;;  %s1105_s10 = scalar_lea.hbm %s1807_s0, 256 }
  0x2c   : > { %p1106_p12 = scmp.lt.s32.totalorder %s1344_s17, %s1807_s0  ;;  %p1107_p2 = scmp.lt.s32.totalorder %s1105_s10, %s1100_s29 }
  0x2d   : > { %p1103_p9 = pnand %p1102_p7, %p1101_p5 }
  0x2e   : > { %p1108_p13 = por %p1107_p2, %p1106_p12 }
  0x2f   : > { %p1104_p11 = pneg %p1103_p9 }
  0x31   : > { %p1109_p0 = pnand %p1108_p13, %p1104_p11 }
  0x33   : > { %1112 = shalt.err (!%p1109_p0)
}
  0x34   : > { %s1113_s7 = scalar_lea.vmem %s165_s22, 64  ;;  %s1233_s8 = smov [#allocation2]  }
  0x35   : > { %p1114_p1 = scmp.ne.s32.totalorder %s165_s22, %s1113_s7  ;;  %s1118_s25 = sshll.u32 %s1233_s8, 4  ;;  %s1119_s25 = int_to_ptr.vmem [resolvable:$false] %s1118_s25 }
  0x36   : > { %s1120_s26 = scalar_lea.vmem %s1119_s25, 128  ;;  %p1121_p9 = scmp.lt.s32.totalorder %s165_s22, %s1119_s25 }
  0x37   : > { %p1116_p6 = pnand %p1114_p1, %p1102_p7  ;;  %p1122_p3 = scmp.lt.s32.totalorder %s1120_s26, %s1113_s7 }
  0x39   : > { %p1117_p5 = pneg %p1116_p6  ;;  %p1123_p4 = por %p1122_p3, %p1121_p9 }
  0x3b   : > { %p1124_p8 = pnand %p1123_p4, %p1117_p5 }
  0x3d   : > { %1127 = shalt.err (!%p1124_p8)
}
  0x3e   : > { %1024 = dma.hbm_to_vmem [thread:$0]  (!%p1347_p10), %s1344_s17, 64, %s165_s22, %s153_s28  }
  0x3f   : > { %s171_s29 = sand.u32 1, %s1228_s15   ;;  %s175_s30 = scalar_lea.vmem [#allocation5], %s1339_s9 }
  0x40   : > { %s183_s4 = sshll.u32 %s175_s30, 4  ;;  %s172_s10 = scalar_lea.sflag [#allocation6], %s171_s29  ;;  %s184_s4 = int_to_ptr.vmem [resolvable:$true] %s183_s4 }
  0x41   : > { %s1128_s11 = scalar_lea.hbm %s1354_s27, 64  ;;  %s1133_s8 = scalar_lea.hbm %s1808_s1, 256 }
  0x42   : > { %p1129_p1 = scmp.ne.s32.totalorder %s1354_s27, %s1128_s11  ;;  %p1134_p8 = scmp.lt.s32.totalorder %s1354_s27, %s1808_s1 }
  0x43   : > { %p1135_p3 = scmp.lt.s32.totalorder %s1133_s8, %s1128_s11 }
  0x44   : > { %p1131_p4 = pnand %p1129_p1, %p1102_p7 }
  0x45   : > { %p1136_p11 = por %p1135_p3, %p1134_p8 }
  0x46   : > { %p1132_p6 = pneg %p1131_p4 }
  0x48   : > { %p1137_p12 = pnand %p1136_p11, %p1132_p6 }
  0x4a   : > { %1140 = shalt.err (!%p1137_p12)
}
  0x4b   : > { %s1141_s9 = scalar_lea.vmem %s184_s4, 64  ;;  %s1234_s17 = smov [#allocation5]  }
  0x4c   : > { %p1142_p2 = scmp.ne.s32.totalorder %s184_s4, %s1141_s9  ;;  %s1146_s22 = sshll.u32 %s1234_s17, 4  ;;  %s1147_s22 = int_to_ptr.vmem [resolvable:$false] %s1146_s22 }
  0x4d   : > { %s1148_s28 = scalar_lea.vmem %s1147_s22, 128  ;;  %p1149_p5 = scmp.lt.s32.totalorder %s184_s4, %s1147_s22 }
  0x4e   : > { %p1144_p13 = pnand %p1142_p2, %p1102_p7  ;;  %p1150_p9 = scmp.lt.s32.totalorder %s1148_s28, %s1141_s9 }
  0x50   : > { %p1145_p0 = pneg %p1144_p13  ;;  %p1151_p1 = por %p1150_p9, %p1149_p5 }
  0x52   : > { %p1152_p4 = pnand %p1151_p1, %p1145_p0 }
  0x54   : > { %1155 = shalt.err (!%p1152_p4)
}
  0x55   : > { %1027 = dma.hbm_to_vmem [thread:$0]  (!%p1347_p10), %s1354_s27, 64, %s184_s4, %s172_s10  }
  0x56   : > { %p1822_p6 = scmp.ne.s32.totalorder %s1817_s20, 0 }
  0x57   : > { %s1399_s29 = sand.u32 (!%p1822_p6), 1, %s1220_s13   ;;  %p1823_p7 = scmp.ne.s32.totalorder (!%p1822_p6), %s1815_s18, 0 }
  0x58   : > { %192 = sbr.rel (%p1822_p6) target bundleno = 384 (0x180), region = 32  ;;  %s1402_s30 = sshll.u32 (!%p1822_p6), %s1399_s29, 2 }
  0x59   : > { %s195_s11 = scalar_lea.sflag (!%p1822_p6), [#allocation3], %s1399_s29  ;;  %s198_s21 = scalar_lea.vmem (!%p1822_p6), [#allocation2], %s1402_s30 }
  0x5d   : > { %1199 = dma.done.wait (%p1823_p7), %s195_s11, 64  }
  0x5e   : > { %1201 = vsyncadd (%p1823_p7), %s195_s11, 4294967232  ;;  %s203_s20 = sand.u32 1, %s1280_s16   ;;  %s207_s27 = scalar_lea.vmem [#allocation5], %s1402_s30 }
  0x5f   : > { %s204_s23 = scalar_lea.sflag [#allocation6], %s203_s20 }
  0x60   : > { %1203 = dma.done.wait (%p1823_p7), %s204_s23, 64  }
  0x61   : > { %1205 = vsyncadd (%p1823_p7), %s204_s23, 4294967232  ;;  %p1824_p10 = scmp.eq.s32.totalorder %s1280_s16, 0 }
  0x63   : > { %1207 = dma.done.wait (%p1824_p10), [#allocation6], 1024   ;;  %p1825_p8 = pmov %p1824_p10 }
  0x64   : > { %v249_v0 = vlaneseq  ;;  %v1235_v1 = vmov 0.0   ;;  %v248_v8 = vld [vmem:[%s207_s27] sm:$0xf]  ;;  %v1236_v16 = vmov 1.0   ;;  %v239_v20 = vld [vmem:[#allocation7] sm:$0xff]  ;;  %v240_v21 = vld [vmem:[#allocation7 + $0x8] sm:$0xff] }
  0x65   : > { %1209 = vsyncadd (%p1825_p8), [#allocation6], 4294966272  ;;  %459 = vmatprep.mubr.f32.mxu0 %v1235_v1  ;;  %572 = vmatprep.mubr.f32.mxu1 %v1235_v1  ;;  %v241_v22 = vld [vmem:[#allocation7 + $0x10] sm:$0xff]  ;;  %v242_v23 = vld [vmem:[#allocation7 + $0x18] sm:$0xff]  ;;  %s1006_s18 = sshll.u32 %s1280_s16, 6  ;;  %s238_s4 = scalar_lea.vmem [#allocation8], %s1402_s30 }
  0x66   : > { %v1423_v2 = vshrl.u32 %v249_v0, 7  ;;  %v243_v24 = vld [vmem:[#allocation7 + $0x20] sm:$0xff]  ;;  %v244_v25 = vld [vmem:[#allocation7 + $0x28] sm:$0xff]  ;;  %v245_v26 = vld [vmem:[#allocation7 + $0x30] sm:$0xff]  ;;  %s802_s10 = sshll.u32 %s238_s4, 4  ;;  %s800_s25 = scalar_lea.hbm %s1810_s3, %s1006_s18  ;;  %s803_s10 = int_to_ptr.vmem [resolvable:$true] %s802_s10 }
  0x67   : > { %v246_v27 = vld [vmem:[#allocation7 + $0x38] sm:$0xff]  ;;  %v247_v30 = vld [vmem:[%s198_s21] sm:$0xf]  ;;  %s788_s26 = scalar_lea.sflag [#allocation4], %s1399_s29  ;;  %s1156_s9 = scalar_lea.vmem %s803_s10, 64 }
  0x68   : > { %v264_v3 = vsub.s32 1, %v1423_v2  ;;  %v272_v4 = vsub.s32 3, %v1423_v2  ;;  %v260_v5 = vsub.s32 0, %v1423_v2  ;;  %v268_v6 = vsub.s32 2, %v1423_v2  ;;  %p1157_p3 = scmp.ne.s32.totalorder %s803_s10, %s1156_s9  ;;  %p1836_p11 = scmp.ne.s32.totalorder %s1820_s6, 0 }
  0x69   : > { %v1430_v7 = vadd.s32 56, %v1423_v2  ;;  %v1433_v9 = vadd.s32 48, %v1423_v2  ;;  %v1436_v10 = vadd.s32 40, %v1423_v2  ;;  %v1455_v15 = vadd.s32 32, %v1423_v2  ;;  %s1238_s17 = smov [#allocation8]  }
  0x6a   : > { %v1440_v11 = vrot.slane %v248_v8, %v264_v3  ;;  %v1444_v12 = vrot.slane %v248_v8, %v272_v4  ;;  %v1448_v13 = vrot.slane %v248_v8, %v260_v5  ;;  %v1452_v14 = vrot.slane %v248_v8, %v268_v6  ;;  %p1158_p12 = pnand %p1157_p3, %p1836_p11  ;;  %s1160_s16 = sshll.u32 %s1238_s17, 4  ;;  %s1161_s16 = int_to_ptr.vmem [resolvable:$false] %s1160_s16 }
  0x6b   : > { %v1482_v17 = vadd.s32 24, %v1423_v2  ;;  %v1497_v18 = vadd.s32 16, %v1423_v2  ;;  %v1512_v19 = vadd.s32 8, %v1423_v2  ;;  %v1596_v35 = vrot.slane %v247_v30, %v260_v5  ;;  %s1162_s22 = scalar_lea.vmem %s1161_s16, 128  ;;  %p1163_p13 = scmp.lt.s32.totalorder %s803_s10, %s1161_s16 }
  0x6c   : > { %vm303_vm0 = vcmp.eq.s32.totalorder %v1440_v11, %v1430_v7  ;;  %vm305_vm1 = vcmp.eq.s32.totalorder %v1444_v12, %v1430_v7  ;;  %vm302_vm2 = vcmp.eq.s32.totalorder %v1448_v13, %v1430_v7  ;;  %vm304_vm3 = vcmp.eq.s32.totalorder %v1452_v14, %v1430_v7  ;;  %p1159_p2 = pneg %p1158_p12  ;;  %p1164_p0 = scmp.lt.s32.totalorder %s1162_s22, %s1156_s9 }
  0x6d   : > { %951 = vmatprep.subr.msk.mxu0 %vm303_vm0, %v1236_v16  ;;  %975 = vmatprep.subr.msk.mxu1 %vm305_vm1, %v1236_v16  ;;  %vm299_vm4 = vcmp.eq.s32.totalorder %v1440_v11, %v1433_v9  ;;  %vm301_vm5 = vcmp.eq.s32.totalorder %v1444_v12, %v1433_v9  ;;  %vm298_vm6 = vcmp.eq.s32.totalorder %v1448_v13, %v1433_v9 }
  0x6e   : > { %952 = vmatpush1.msk.msra.mxu0 %vm302_vm2, %v1236_v16  ;;  %976 = vmatpush1.msk.msra.mxu1 %vm304_vm3, %v1236_v16  ;;  %vm300_vm7 = vcmp.eq.s32.totalorder %v1452_v14, %v1433_v9  ;;  %vm295_vm8 = vcmp.eq.s32.totalorder %v1440_v11, %v1436_v10  ;;  %vm297_vm9 = vcmp.eq.s32.totalorder %v1444_v12, %v1436_v10  ;;  %p1165_p5 = por %p1164_p0, %p1163_p13 }
  0x6f   : > { %953 = vmatprep.subr.msk.mxu0 %vm299_vm4, %v1236_v16  ;;  %977 = vmatprep.subr.msk.mxu1 %vm301_vm5, %v1236_v16  ;;  %vm294_vm10 = vcmp.eq.s32.totalorder %v1448_v13, %v1436_v10  ;;  %vm296_vm11 = vcmp.eq.s32.totalorder %v1452_v14, %v1436_v10  ;;  %vm291_vm12 = vcmp.eq.s32.totalorder %v1440_v11, %v1455_v15 }
  0x70   : > { %954 = vmatpush1.msk.msra.mxu0 %vm298_vm6, %v1236_v16  ;;  %978 = vmatpush1.msk.msra.mxu1 %vm300_vm7, %v1236_v16  ;;  %vm293_vm13 = vcmp.eq.s32.totalorder %v1444_v12, %v1455_v15  ;;  %vm290_vm14 = vcmp.eq.s32.totalorder %v1448_v13, %v1455_v15  ;;  %vm292_vm15 = vcmp.eq.s32.totalorder %v1452_v14, %v1455_v15  ;;  %p1166_p9 = pnand %p1165_p5, %p1159_p2 }
  0x71   : > { %955 = vmatprep.subr.msk.mxu0 %vm295_vm8, %v1236_v16  ;;  %979 = vmatprep.subr.msk.mxu1 %vm297_vm9, %v1236_v16  ;;  %vm287_vm0 = vcmp.eq.s32.totalorder %v1440_v11, %v1482_v17  ;;  %vm289_vm1 = vcmp.eq.s32.totalorder %v1444_v12, %v1482_v17  ;;  %vm286_vm2 = vcmp.eq.s32.totalorder %v1448_v13, %v1482_v17 }
  0x72   : > { %956 = vmatpush1.msk.msra.mxu0 %vm294_vm10, %v1236_v16  ;;  %980 = vmatpush1.msk.msra.mxu1 %vm296_vm11, %v1236_v16  ;;  %vm288_vm3 = vcmp.eq.s32.totalorder %v1452_v14, %v1482_v17  ;;  %vm283_vm4 = vcmp.eq.s32.totalorder %v1440_v11, %v1497_v18  ;;  %vm285_vm5 = vcmp.eq.s32.totalorder %v1444_v12, %v1497_v18 }
  0x73   : > { %957 = vmatprep.subr.msk.mxu0 %vm291_vm12, %v1236_v16  ;;  %981 = vmatprep.subr.msk.mxu1 %vm293_vm13, %v1236_v16  ;;  %vm282_vm6 = vcmp.eq.s32.totalorder %v1448_v13, %v1497_v18  ;;  %vm284_vm7 = vcmp.eq.s32.totalorder %v1452_v14, %v1497_v18  ;;  %vm279_vm8 = vcmp.eq.s32.totalorder %v1440_v11, %v1512_v19 }
  0x74   : > { %958 = vmatpush1.msk.msra.mxu0 %vm290_vm14, %v1236_v16  ;;  %982 = vmatpush1.msk.msra.mxu1 %vm292_vm15, %v1236_v16  ;;  %vm281_vm9 = vcmp.eq.s32.totalorder %v1444_v12, %v1512_v19  ;;  %vm278_vm10 = vcmp.eq.s32.totalorder %v1448_v13, %v1512_v19  ;;  %vm280_vm11 = vcmp.eq.s32.totalorder %v1452_v14, %v1512_v19 }
  0x75   : > { %959 = vmatprep.subr.msk.mxu0 %vm287_vm0, %v1236_v16  ;;  %983 = vmatprep.subr.msk.mxu1 %vm289_vm1, %v1236_v16  ;;  %vm275_vm12 = vcmp.eq.s32.totalorder %v1440_v11, %v1423_v2  ;;  %vm277_vm13 = vcmp.eq.s32.totalorder %v1444_v12, %v1423_v2  ;;  %vm274_vm14 = vcmp.eq.s32.totalorder %v1448_v13, %v1423_v2  ;;  %vm370_vm0 = vcmask 523264  }
  0x76   : > { %960 = vmatpush1.msk.msra.mxu0 %vm286_vm2, %v1236_v16  ;;  %984 = vmatpush1.msk.msra.mxu1 %vm288_vm3, %v1236_v16  ;;  %vm276_vm15 = vcmp.eq.s32.totalorder %v1452_v14, %v1423_v2  ;;  %v1600_v36 = vrot.slane %v247_v30, %v268_v6  ;;  %v1604_v37 = vrot.slane %v247_v30, %v264_v3 }
  0x77   : > { %961 = vmatprep.subr.msk.mxu0 %vm283_vm4, %v1236_v16  ;;  %985 = vmatprep.subr.msk.mxu1 %vm285_vm5, %v1236_v16  ;;  %v1608_v38 = vrot.slane %v247_v30, %v272_v4  ;;  %vm637_vm1 = vcmp.eq.s32.totalorder %v1596_v35, %v1423_v2  ;;  %vm641_vm5 = vcmp.eq.s32.totalorder %v1596_v35, %v1512_v19 }
  0x78   : > { %962 = vmatpush1.msk.msra.mxu0 %vm282_vm6, %v1236_v16  ;;  %986 = vmatpush1.msk.msra.mxu1 %vm284_vm7, %v1236_v16  ;;  %vm639_vm2 = vcmp.eq.s32.totalorder %v1600_v36, %v1423_v2  ;;  %vm638_vm3 = vcmp.eq.s32.totalorder %v1604_v37, %v1423_v2  ;;  %vm643_vm6 = vcmp.eq.s32.totalorder %v1600_v36, %v1512_v19 }
  0x79   : > { %963 = vmatprep.subr.msk.mxu0 %vm279_vm8, %v1236_v16  ;;  %987 = vmatprep.subr.msk.mxu1 %vm281_vm9, %v1236_v16  ;;  %vm642_vm7 = vcmp.eq.s32.totalorder %v1604_v37, %v1512_v19  ;;  %vm644_vm8 = vcmp.eq.s32.totalorder %v1608_v38, %v1512_v19  ;;  %vm645_vm9 = vcmp.eq.s32.totalorder %v1596_v35, %v1497_v18 }
  0x7a   : > { %964 = vmatpush1.msk.msra.mxu0 %vm278_vm10, %v1236_v16  ;;  %988 = vmatpush1.msk.msra.mxu1 %vm280_vm11, %v1236_v16  ;;  %vm647_vm10 = vcmp.eq.s32.totalorder %v1600_v36, %v1497_v18  ;;  %vm654_vm4 = vcmp.eq.s32.totalorder %v1604_v37, %v1455_v15  ;;  %vm658_vm11 = vcmp.eq.s32.totalorder %v1604_v37, %v1436_v10 }
  0x7b   : > { %965 = vmatprep.subr.msk.mxu0 %vm275_vm12, %v1236_v16  ;;  %989 = vmatprep.subr.msk.mxu1 %vm277_vm13, %v1236_v16  ;;  %vm656_vm13 = vcmp.eq.s32.totalorder %v1608_v38, %v1455_v15  ;;  %vm660_vm12 = vcmp.eq.s32.totalorder %v1608_v38, %v1436_v10 }
  0x7c   : > { %966 = vmatpush1.msk.msra.mxu0 %vm274_vm14, %v1236_v16  ;;  %990 = vmatpush1.msk.msra.mxu1 %vm276_vm15, %v1236_v16  ;;  %vm651_vm14 = vcmp.eq.s32.totalorder %v1600_v36, %v1482_v17  ;;  %vm661_vm15 = vcmp.eq.s32.totalorder %v1596_v35, %v1433_v9 }
  0x7d   : > { %967 = vmatmul.mubr.msk.f32.vlgmr.msra.gmra.mxu0 %vm370_vm0, %v239_v20  ;;  %991 = vmatmul.mubr.msk.f32.vlgmr.msra.gmra.mxu1 %vm370_vm0, %v239_v20 }
  0x7e   : > { %465 = vmatprep.mubr.f32.mxu0 %v1235_v1  ;;  %578 = vmatprep.mubr.f32.mxu1 %v1235_v1 }
  0x81   : > { %968 = vmatmul.mubr.msk.f32.gmra.mxu0 %vm370_vm0, %v240_v21  ;;  %992 = vmatmul.mubr.msk.f32.gmra.mxu1 %vm370_vm0, %v240_v21 }
  0x82   : > { %471 = vmatprep.mubr.f32.mxu0 %v1235_v1  ;;  %584 = vmatprep.mubr.f32.mxu1 %v1235_v1 }
  0x85   : > { %969 = vmatmul.mubr.msk.f32.gmra.mxu0 %vm370_vm0, %v241_v22  ;;  %993 = vmatmul.mubr.msk.f32.gmra.mxu1 %vm370_vm0, %v241_v22 }
  0x86   : > { %477 = vmatprep.mubr.f32.mxu0 %v1235_v1  ;;  %590 = vmatprep.mubr.f32.mxu1 %v1235_v1 }
  0x89   : > { %970 = vmatmul.mubr.msk.f32.gmra.mxu0 %vm370_vm0, %v242_v23  ;;  %994 = vmatmul.mubr.msk.f32.gmra.mxu1 %vm370_vm0, %v242_v23 }
  0x8a   : > { %483 = vmatprep.mubr.f32.mxu0 %v1235_v1  ;;  %596 = vmatprep.mubr.f32.mxu1 %v1235_v1 }
  0x8d   : > { %971 = vmatmul.mubr.msk.f32.gmra.mxu0 %vm370_vm0, %v243_v24  ;;  %995 = vmatmul.mubr.msk.f32.gmra.mxu1 %vm370_vm0, %v243_v24 }
  0x8e   : > { %489 = vmatprep.mubr.f32.mxu0 %v1235_v1  ;;  %602 = vmatprep.mubr.f32.mxu1 %v1235_v1 }
  0x91   : > { %972 = vmatmul.mubr.msk.f32.gmra.mxu0 %vm370_vm0, %v244_v25  ;;  %996 = vmatmul.mubr.msk.f32.gmra.mxu1 %vm370_vm0, %v244_v25 }
  0x92   : > { %495 = vmatprep.mubr.f32.mxu0 %v1235_v1  ;;  %608 = vmatprep.mubr.f32.mxu1 %v1235_v1 }
  0x95   : > { %973 = vmatmul.mubr.msk.f32.gmra.mxu0 %vm370_vm0, %v245_v26  ;;  %997 = vmatmul.mubr.msk.f32.gmra.mxu1 %vm370_vm0, %v245_v26 }
  0x96   : > { %501 = vmatprep.mubr.f32.mxu0 %v1235_v1  ;;  %614 = vmatprep.mubr.f32.mxu1 %v1235_v1 }
  0x99   : > { %974 = vmatmul.mubr.msk.f32.gmra.mxu0 %vm370_vm0, %v246_v27  ;;  %998 = vmatmul.mubr.msk.f32.gmra.mxu1 %vm370_vm0, %v246_v27  ;;  %vm663_vm0 = vcmp.eq.s32.totalorder %v1600_v36, %v1433_v9 }
 0x13d   : > { %v461_v28 = vpop.f32.mrf.mxu0  ;;  %v574_v29 = vpop.f32.mrf.mxu1 }
 0x13e   : > { %v669_v51 = vsel %vm637_vm1, %v461_v28, 0.0  ;;  %v671_v52 = vsel %vm639_vm2, %v574_v29, 0.0  ;;  %vm1826_vm1 = vcmp.eq.s32.totalorder %v1608_v38, %v1423_v2  ;;  %vm665_vm2 = vcmp.eq.s32.totalorder %v1596_v35, %v1430_v7 }
 0x13f   : > { %v463_v31 = vpop.f32.mrf.mxu0  ;;  %v576_v32 = vpop.f32.mrf.mxu1 }
 0x140   : > { %v670_v59 = vsel %vm638_vm3, %v463_v31, 0.0  ;;  %v672_v60 = vsel %vm1826_vm1, %v576_v32, 0.0  ;;  %vm1828_vm3 = vcmp.eq.s32.totalorder %v1608_v38, %v1497_v18  ;;  %vm1831_vm1 = vcmp.eq.s32.totalorder %v1608_v38, %v1482_v17 }
 0x141   : > { %v467_v33 = vpop.f32.mrf.mxu0  ;;  %v580_v34 = vpop.f32.mrf.mxu1 }
 0x142   : > { %v673_v49 = vsel %vm641_vm5, %v467_v33, 0.0  ;;  %v675_v50 = vsel %vm643_vm6, %v580_v34, 0.0  ;;  %vm662_vm5 = vcmp.eq.s32.totalorder %v1604_v37, %v1433_v9  ;;  %vm664_vm6 = vcmp.eq.s32.totalorder %v1608_v38, %v1433_v9 }
 0x143   : > { %v469_v39 = vpop.f32.mrf.mxu0  ;;  %v582_v40 = vpop.f32.mrf.mxu1  ;;  %v701_v61 = vadd.f32 %v673_v49, %v669_v51  ;;  %v727_v62 = vadd.f32 %v675_v50, %v671_v52 }
 0x144   : > { %v674_v55 = vsel %vm642_vm7, %v469_v39, 0.0  ;;  %v676_v56 = vsel %vm644_vm8, %v582_v40, 0.0  ;;  %vm667_vm7 = vcmp.eq.s32.totalorder %v1600_v36, %v1430_v7  ;;  %vm1827_vm8 = vcmp.eq.s32.totalorder %v1604_v37, %v1497_v18 }
 0x145   : > { %v473_v41 = vpop.f32.mrf.mxu0  ;;  %v586_v42 = vpop.f32.mrf.mxu1  ;;  %v714_v8 = vadd.f32 %v674_v55, %v670_v59  ;;  %v740_v11 = vadd.f32 %v676_v56, %v672_v60 }
 0x146   : > { %v677_v57 = vsel %vm645_vm9, %v473_v41, 0.0  ;;  %v679_v58 = vsel %vm647_vm10, %v586_v42, 0.0  ;;  %vm1829_vm9 = vcmp.eq.s32.totalorder %v1596_v35, %v1482_v17  ;;  %vm1830_vm10 = vcmp.eq.s32.totalorder %v1604_v37, %v1482_v17 }
 0x147   : > { %v475_v43 = vpop.f32.mrf.mxu0  ;;  %v588_v44 = vpop.f32.mrf.mxu1  ;;  %v702_v12 = vadd.f32 %v701_v61, %v677_v57  ;;  %v728_v13 = vadd.f32 %v727_v62, %v679_v58 }
 0x148   : > { %v678_v3 = vsel %vm1827_vm8, %v475_v43, 0.0  ;;  %v680_v4 = vsel %vm1828_vm3, %v588_v44, 0.0  ;;  %vm1832_vm8 = vcmp.eq.s32.totalorder %v1596_v35, %v1455_v15  ;;  %vm1834_vm3 = vcmp.eq.s32.totalorder %v1596_v35, %v1436_v10 }
 0x149   : > { %v479_v45 = vpop.f32.mrf.mxu0  ;;  %v592_v46 = vpop.f32.mrf.mxu1  ;;  %v715_v22 = vadd.f32 %v714_v8, %v678_v3  ;;  %v741_v23 = vadd.f32 %v740_v11, %v680_v4 }
 0x14a   : > { %v681_v5 = vsel %vm1829_vm9, %v479_v45, 0.0  ;;  %v683_v6 = vsel %vm651_vm14, %v592_v46, 0.0  ;;  %vm1833_vm14 = vcmp.eq.s32.totalorder %v1600_v36, %v1455_v15  ;;  %vm1835_vm9 = vcmp.eq.s32.totalorder %v1600_v36, %v1436_v10 }
 0x14b   : > { %v481_v47 = vpop.f32.mrf.mxu0  ;;  %v594_v48 = vpop.f32.mrf.mxu1  ;;  %v703_v24 = vadd.f32 %v702_v12, %v681_v5  ;;  %v729_v25 = vadd.f32 %v728_v13, %v683_v6  ;;  %v1237_v13 = vmov 1966171168  }
 0x14c   : > { %v682_v19 = vsel %vm1830_vm10, %v481_v47, 0.0  ;;  %v684_v18 = vsel %vm1831_vm1, %v594_v48, 0.0 }
 0x14d   : > { %v485_v53 = vpop.f32.mrf.mxu0  ;;  %v598_v54 = vpop.f32.mrf.mxu1  ;;  %v716_v31 = vadd.f32 %v715_v22, %v682_v19  ;;  %v742_v32 = vadd.f32 %v741_v23, %v684_v18 }
 0x14e   : > { %v685_v20 = vsel %vm1832_vm8, %v485_v53, 0.0  ;;  %v687_v21 = vsel %vm1833_vm14, %v598_v54, 0.0 }
 0x14f   : > { %v487_v63 = vpop.f32.mrf.mxu0  ;;  %v600_v1 = vpop.f32.mrf.mxu1  ;;  %v704_v33 = vadd.f32 %v703_v24, %v685_v20  ;;  %v730_v34 = vadd.f32 %v729_v25, %v687_v21 }
 0x150   : > { %v686_v28 = vsel %vm654_vm4, %v487_v63, 0.0  ;;  %v688_v17 = vsel %vm656_vm13, %v600_v1, 0.0  ;;  %vm666_vm4 = vcmp.eq.s32.totalorder %v1604_v37, %v1430_v7 }
 0x151   : > { %v491_v14 = vpop.f32.mrf.mxu0  ;;  %v604_v16 = vpop.f32.mrf.mxu1  ;;  %v717_v44 = vadd.f32 %v716_v31, %v686_v28  ;;  %v743_v45 = vadd.f32 %v742_v32, %v688_v17 }
 0x152   : > { %v689_v29 = vsel %vm1834_vm3, %v491_v14, 0.0  ;;  %v691_v30 = vsel %vm1835_vm9, %v604_v16, 0.0  ;;  %v760_v14 = vunpack.c.l.s4 %v1237_v13 }
 0x153   : > { %v493_v26 = vpop.f32.mrf.mxu0  ;;  %v606_v27 = vpop.f32.mrf.mxu1  ;;  %v705_v46 = vadd.f32 %v704_v33, %v689_v29  ;;  %v731_v47 = vadd.f32 %v730_v34, %v691_v30 }
 0x154   : > { %v690_v41 = vsel %vm658_vm11, %v493_v26, 0.0  ;;  %v692_v15 = vsel %vm660_vm12, %v606_v27, 0.0  ;;  %vm668_vm11 = vcmp.eq.s32.totalorder %v1608_v38, %v1430_v7  ;;  %v761_v7 = vunpack.c.0.s8 %v760_v14 }
 0x155   : > { %v497_v39 = vpop.f32.mrf.mxu0  ;;  %v610_v40 = vpop.f32.mrf.mxu1  ;;  %v718_v51 = vadd.f32 %v717_v44, %v690_v41  ;;  %v744_v52 = vadd.f32 %v743_v45, %v692_v15  ;;  %vm784_vm12 = vcmp.lt.s32.totalorder %v249_v0, 512 }
 0x156   : > { %v693_v42 = vsel %vm661_vm15, %v497_v39, 0.0  ;;  %v695_v43 = vsel %vm663_vm0, %v610_v40, 0.0  ;;  %v764_v17 = vsub.s32 %v761_v7, %v1423_v2 }
 0x157   : > { %v499_v48 = vpop.f32.mrf.mxu0  ;;  %v612_v49 = vpop.f32.mrf.mxu1  ;;  %v706_v53 = vadd.f32 %v705_v46, %v693_v42  ;;  %v732_v54 = vadd.f32 %v731_v47, %v695_v43 }
 0x158   : > { %v694_v50 = vsel %vm662_vm5, %v499_v48, 0.0  ;;  %v696_v10 = vsel %vm664_vm6, %v612_v49, 0.0 }
 0x159   : > { %v503_v55 = vpop.f32.mrf.mxu0  ;;  %v616_v56 = vpop.f32.mrf.mxu1  ;;  %v719_v58 = vadd.f32 %v718_v51, %v694_v50  ;;  %v745_v59 = vadd.f32 %v744_v52, %v696_v10 }
 0x15a   : > { %v697_v57 = vsel %vm665_vm2, %v503_v55, 0.0  ;;  %v699_v9 = vsel %vm667_vm7, %v616_v56, 0.0 }
 0x15b   : > { %v707_v60 = vadd.f32 %v706_v53, %v697_v57  ;;  %v733_v61 = vadd.f32 %v732_v54, %v699_v9  ;;  %v505_v62 = vpop.f32.mrf.mxu0  ;;  %v618_v63 = vpop.f32.mrf.mxu1 }
 0x15c   : > { %v698_v1 = vsel %vm666_vm4, %v505_v62, 0.0  ;;  %v700_v3 = vsel %vm668_vm11, %v618_v63, 0.0 }
 0x15d   : > { %v708_v35 = vrot.slane %v707_v60, 4  ;;  %v734_v4 = vrot.slane %v733_v61, 4  ;;  %v720_v5 = vadd.f32 %v719_v58, %v698_v1  ;;  %v746_v6 = vadd.f32 %v745_v59, %v700_v3 }
 0x15f   : > { %v709_v36 = vadd.f32 %v708_v35, %v707_v60  ;;  %v735_v8 = vadd.f32 %v734_v4, %v733_v61  ;;  %v721_v11 = vrot.slane %v720_v5, 4  ;;  %v747_v12 = vrot.slane %v746_v6, 4 }
 0x161   : > { %v710_v16 = vrot.slane %v709_v36, 2  ;;  %v736_v19 = vrot.slane %v735_v8, 2  ;;  %v722_v18 = vadd.f32 %v721_v11, %v720_v5  ;;  %v748_v20 = vadd.f32 %v747_v12, %v746_v6 }
 0x163   : > { %v711_v37 = vadd.f32 %v710_v16, %v709_v36  ;;  %v737_v21 = vadd.f32 %v736_v19, %v735_v8  ;;  %v723_v22 = vrot.slane %v722_v18, 2  ;;  %v749_v23 = vrot.slane %v748_v20, 2 }
 0x165   : > { %v712_v38 = vrot.slane %v711_v37, 1  ;;  %v738_v24 = vrot.slane %v737_v21, 1  ;;  %v724_v25 = vadd.f32 %v723_v22, %v722_v18  ;;  %v750_v26 = vadd.f32 %v749_v23, %v748_v20 }
 0x167   : > { %v725_v27 = vrot.slane %v724_v25, 1  ;;  %v751_v28 = vrot.slane %v750_v26, 1  ;;  %v713_v29 = vadd.f32 %v712_v38, %v711_v37  ;;  %v739_v30 = vadd.f32 %v738_v24, %v737_v21 }
 0x169   : > { %v726_v31 = vadd.f32 %v725_v27, %v724_v25  ;;  %v752_v32 = vadd.f32 %v751_v28, %v750_v26 }
 0x16b   : > { %v757_v33 = vcombine.low %v713_v29, %v726_v31  ;;  %v758_v34 = vcombine.low %v739_v30, %v752_v32 }
 0x16d   : > { %v765_v39 = vrot.slane %v757_v33, %v764_v17  ;;  %v772_v40 = vrot.slane %v758_v34, %v764_v17 }
 0x16f   : > { %v773_v41 = vcombine.low %v765_v39, %v772_v40 }
 0x171   : > { %v780_v15 = vrot.slane %v773_v41, %v764_v17 }
 0x173   : > { %786 = vst.msk [vmem:[%s238_s4] sm:$0xf] %vm784_vm12, %v780_v15 }
 0x174   : > { %1169 = shalt.err (!%p1166_p9)
}
 0x175   : > { %s1170_s28 = scalar_lea.hbm %s800_s25, 64  ;;  %s1174_s11 = scalar_lea.hbm %s1810_s3, 256 }
 0x176   : > { %p1171_p1 = scmp.ne.s32.totalorder %s800_s25, %s1170_s28  ;;  %p1175_p7 = scmp.lt.s32.totalorder %s800_s25, %s1810_s3 }
 0x177   : > { %p1176_p10 = scmp.lt.s32.totalorder %s1174_s11, %s1170_s28 }
 0x178   : > { %p1172_p4 = pnand %p1171_p1, %p1836_p11 }
 0x179   : > { %p1177_p8 = por %p1176_p10, %p1175_p7 }
 0x17a   : > { %p1173_p6 = pneg %p1172_p4 }
 0x17c   : > { %p1178_p3 = pnand %p1177_p8, %p1173_p6 }
 0x17e   : > { %1181 = shalt.err (!%p1178_p3)
}
 0x17f   : > { %1015 = dma.vmem_to_hbm [thread:$0]  (%p1836_p11), %s803_s10, 64, %s800_s25, %s788_s26  }
 0x180 PF: > { %p1035_p12 = scmp.ge.s32.totalorder %s1228_s15, 2  ;;  %s814_s23 = sand.u32 1, %s1216_s12  }
 0x181   : > { %p1837_p2 = scmp.ne.s32.totalorder %s1816_s19, 0  ;;  %s815_s27 = scalar_lea.sflag [#allocation4], %s814_s23 }
 0x183   : > { %p1029_p13 = pnand %p1035_p12, %p1837_p2 }
 0x185   : > { %p1030_p0 = pneg %p1029_p13 }
 0x187   : > { %1211 = dma.done.wait (%p1030_p0), %s815_s27, 64  }
 0x188   : > { %1213 = vsyncadd (%p1030_p0), %s815_s27, 4294967232  ;;  %p19_p5 = scmp.ge.s32.totalorder %s1312_s24, 6   ;;  %s1838_s12 = smov %s1220_s13 }
 0x189   : > { %s1839_s13 = smov %s1224_s14  ;;  %s1840_s14 = smov %s1329_s5 }
 0x18a   : > { %s1841_s15 = smov %s1312_s24  ;;  %21 = sbr.rel (!%p19_p5) target bundleno = 7 (0x7), region = 94 }
 0x18f   :  { %820 = vsyncpa [#allocation3], 1 }
 0x190   :  { %822 = vsyncpa [#allocation3 + $0x1], 1 }
 0x191   :  { %823 = vsyncpa [#allocation6], 1 }
 0x192   :  { %825 = vsyncpa [#allocation6 + $0x1], 1 }
 0x193   :  { %826 = vsyncpa [#allocation4], 1 }
 0x194   :  { %828 = vsyncpa [#allocation4 + $0x1], 1 }

</bundles_post_ra>
